<compile_context>
chip_gen: v6e
topology: v6e:2x2x1
jax: 0.10.0
libtpu: 0.0.40
codegen_flags: <defaults>
</compile_context>

<pallas_src>
import functools

import jax
import jax.numpy as jnp
from jax.experimental import pallas as pl
from jax.experimental.pallas import tpu as pltpu

EPS = 1e-5            # torch.nn.BatchNorm1d default
NEG_SLOPE = 0.01      # torch.nn.LeakyReLU default
DEFAULT_TILE_N = 8192 # rows per grid step (f32, F=64 -> 2 MiB x tile)


def _leaky_relu(x):
    return jnp.where(x >= 0, x, NEG_SLOPE * x)


def _bn(x, gamma, beta, mean, var):
    return gamma * (x - mean) * jax.lax.rsqrt(var + EPS) + beta


def _round_up(a, b):
    return (a + b - 1) // b * b


# --------------------------------------------------------------------------
# Kernel: fused MLP on one (tile_n, F) batch tile.  BN already folded into
# the Linear weights, so each block is just matmul + bias + LeakyReLU.
# --------------------------------------------------------------------------
def fcnn_kernel(x_ref,
                w1_ref, b1_ref, w2_ref, b2_ref, w3_ref, b3_ref,
                w4_ref, b4_ref,
                o_ref):
    h = x_ref[...]
    h = _leaky_relu(jnp.dot(h, w1_ref[...],
                            preferred_element_type=jnp.float32) + b1_ref[...])
    h = _leaky_relu(jnp.dot(h, w2_ref[...],
                            preferred_element_type=jnp.float32) + b2_ref[...])
    h = _leaky_relu(jnp.dot(h, w3_ref[...],
                            preferred_element_type=jnp.float32) + b3_ref[...])
    h = _leaky_relu(jnp.dot(h, w4_ref[...],
                            preferred_element_type=jnp.float32) + b4_ref[...])
    o_ref[...] = h.astype(o_ref.dtype)


# --------------------------------------------------------------------------
# Trace-time parameter folding: BN -> Linear.
# --------------------------------------------------------------------------
def _fold_params(params):
    (w1, b1, g1, be1, m1, v1,
     w2, b2, g2, be2, m2, v2,
     w3, b3, g3, be3, m3, v3,
     w4, b4) = params

    def fold(w, b, g, be, m, v):
        s = g * jax.lax.rsqrt(v + EPS)            # (1, fout)
        return w * s, (b - m) * s + be

    w1f, b1f = fold(w1, b1, g1, be1, m1, v1)
    w2f, b2f = fold(w2, b2, g2, be2, m2, v2)
    w3f, b3f = fold(w3, b3, g3, be3, m3, v3)
    return (w1f, b1f, w2f, b2f, w3f, b3f, w4, b4)


# --------------------------------------------------------------------------
# Wrapper: batch-tiled pallas_call (1-D grid over rows, ragged tail masked).
# --------------------------------------------------------------------------
@functools.partial(jax.jit, static_argnames=("tile_n",))
def fcnn_forward(x, params, tile_n=DEFAULT_TILE_N):
    """x: [N, F] float32.  params: flat tuple from init_params().  Returns [N, 1]."""
    n, f = x.shape
    folded = _fold_params(params)

    # Tile: large for bandwidth, never larger than needed, multiple of 8
    # (sublane constraint).  Non-dividing trailing block is masked by Pallas.
    tile = _round_up(min(tile_n, n), 8)
    grid = (pl.cdiv(n, tile),)

    x_spec = pl.BlockSpec((tile, f), lambda i: (i, 0))
    out_spec = pl.BlockSpec((tile, 1), lambda i: (i, 0))
    # Full-array blocks with a constant index_map -> parameters are fetched
    # once and stay resident in VMEM across all batch tiles.
    param_specs = [pl.BlockSpec(p.shape, lambda i: (0, 0)) for p in folded]

    out = pl.pallas_call(
        fcnn_kernel,
        out_shape=jax.ShapeDtypeStruct((n, 1), jnp.float32),
        grid=grid,
        in_specs=[x_spec] + param_specs,
        out_specs=out_spec,
        compiler_params=pltpu.CompilerParams(
            dimension_semantics=("parallel",)),
    )(x, *folded)

    return out


# --------------------------------------------------------------------------
# Parameter init (matches torch defaults) and pure-jnp reference (unfolded).
# --------------------------------------------------------------------------
def init_params(key, input_shape):
    dims = [(input_shape, 32), (32, 16), (16, 4), (4, 1)]
    params = []
    for li, (fin, fout) in enumerate(dims):
        key, kw, kb = jax.random.split(key, 3)
        bound = 1.0 / jnp.sqrt(fin)
        # stored as [in, out] (transpose of torch Linear.weight)
        w = jax.random.uniform(kw, (fin, fout), jnp.float32, -bound, bound)
        b = jax.random.uniform(kb, (1, fout), jnp.float32, -bound, bound)
        params.extend([w, b])
        if li < 3:  # BatchNorm1d follows the first three Linears
            gamma = jnp.ones((1, fout), jnp.float32)
            beta = jnp.zeros((1, fout), jnp.float32)
            rmean = jnp.zeros((1, fout), jnp.float32)
            # non-trivial running_var so BN folding is actually exercised
            key, kv = jax.random.split(key)
            rvar = jax.random.uniform(kv, (1, fout), jnp.float32, 0.5, 1.5)
            params.extend([gamma, beta, rmean, rvar])
    return tuple(params)


def reference_forward(x, params):
    (w1, b1, g1, be1, m1, v1,
     w2, b2, g2, be2, m2, v2,
     w3, b3, g3, be3, m3, v3,
     w4, b4) = params
    h = _leaky_relu(_bn(x @ w1 + b1, g1, be1, m1, v1))
    h = _leaky_relu(_bn(h @ w2 + b2, g2, be2, m2, v2))
    h = _leaky_relu(_bn(h @ w3 + b3, g3, be3, m3, v3))
    return _leaky_relu(h @ w4 + b4)


if __name__ == "__main__":
    INPUT_SHAPE = 64   # inputShape argument to FCNN.__init__

    key = jax.random.PRNGKey(0)
    key, kx1, kx2, kx3 = jax.random.split(key, 4)
    params = init_params(key, INPUT_SHAPE)

    # Small batch: single grid step, exact-fit tile.
    x_small = jax.random.normal(kx1, (8, INPUT_SHAPE), jnp.float32)
    out_small = jax.block_until_ready(fcnn_forward(x_small, params))
    ref_small = reference_forward(x_small, params)
    assert out_small.shape == (8, 1), out_small.shape
    assert jnp.allclose(out_small, ref_small, atol=1e-4, rtol=1e-5), "small-batch mismatch"

    # Ragged batch with a small tile: multi-step grid + masked trailing block.
    x_big = jax.random.normal(kx2, (200, INPUT_SHAPE), jnp.float32)
    out_big = jax.block_until_ready(fcnn_forward(x_big, params, tile_n=64))
    ref_big = reference_forward(x_big, params)
    assert out_big.shape == (200, 1), out_big.shape
    assert jnp.allclose(out_big, ref_big, atol=1e-4, rtol=1e-5), "tiled-batch mismatch"

    # Sub-sublane-aligned batch: block (16, F) over a 13-row array.
    x_odd = jax.random.normal(kx3, (13, INPUT_SHAPE), jnp.float32)
    out_odd = jax.block_until_ready(fcnn_forward(x_odd, params))
    ref_odd = reference_forward(x_odd, params)
    assert out_odd.shape == (13, 1), out_odd.shape
    assert jnp.allclose(out_odd, ref_odd, atol=1e-4, rtol=1e-5), "unaligned-batch mismatch"

    print("KERNEL_OK")
</pallas_src>

<mosaic_0001>
module attributes {stable_mosaic.version = 11 : i64} {
  func.func @fcnn_kernel(%arg0: i32, %arg1: memref<8x64xf32, #tpu.memory_space<vmem>>, %arg2: memref<64x32xf32, #tpu.memory_space<vmem>>, %arg3: memref<1x32xf32, #tpu.memory_space<vmem>>, %arg4: memref<32x16xf32, #tpu.memory_space<vmem>>, %arg5: memref<1x16xf32, #tpu.memory_space<vmem>>, %arg6: memref<16x4xf32, #tpu.memory_space<vmem>>, %arg7: memref<1x4xf32, #tpu.memory_space<vmem>>, %arg8: memref<4x1xf32, #tpu.memory_space<vmem>>, %arg9: memref<1x1xf32, #tpu.memory_space<vmem>>, %arg10: memref<8x1xf32, #tpu.memory_space<vmem>>) attributes {dimension_semantics = [#tpu.dimension_semantics<parallel>], iteration_bounds = array<i64: 1>, scalar_prefetch = 0 : i64, scratch_operands = 0 : i64, tpu.core_type = #tpu.core_type<tc>, window_params = [{transform_indices = @transform_0, window_bounds = array<i64: 8, 64>}, {pipeline_mode = #tpu.pipeline_mode<synchronous>, transform_indices = @transform_1, window_bounds = array<i64: 64, 32>}, {pipeline_mode = #tpu.pipeline_mode<synchronous>, transform_indices = @transform_2, window_bounds = array<i64: 1, 32>}, {pipeline_mode = #tpu.pipeline_mode<synchronous>, transform_indices = @transform_3, window_bounds = array<i64: 32, 16>}, {pipeline_mode = #tpu.pipeline_mode<synchronous>, transform_indices = @transform_4, window_bounds = array<i64: 1, 16>}, {pipeline_mode = #tpu.pipeline_mode<synchronous>, transform_indices = @transform_5, window_bounds = array<i64: 16, 4>}, {pipeline_mode = #tpu.pipeline_mode<synchronous>, transform_indices = @transform_6, window_bounds = array<i64: 1, 4>}, {pipeline_mode = #tpu.pipeline_mode<synchronous>, transform_indices = @transform_7, window_bounds = array<i64: 4, 1>}, {pipeline_mode = #tpu.pipeline_mode<synchronous>, transform_indices = @transform_8, window_bounds = array<i64: 1, 1>}, {transform_indices = @transform_9, window_bounds = array<i64: 8, 1>}]} {
    %c0 = arith.constant 0 : index
    %c0_0 = arith.constant 0 : index
    %0 = vector.load %arg1[%c0, %c0_0] : memref<8x64xf32, #tpu.memory_space<vmem>>, vector<8x64xf32>
    %c0_1 = arith.constant 0 : index
    %c0_2 = arith.constant 0 : index
    %1 = vector.load %arg2[%c0_1, %c0_2] : memref<64x32xf32, #tpu.memory_space<vmem>>, vector<64x32xf32>
    %cst = arith.constant dense<0.000000e+00> : vector<8x32xf32>
    %2 = tpu.matmul %0, %1, %cst {dimension_numbers = #tpu.dot_dimension_numbers<[1], [0], [0], [1], [0, 0, 1, 1], [], []>} : vector<8x64xf32>, vector<64x32xf32>, vector<8x32xf32> -> vector<8x32xf32>
    %c0_3 = arith.constant 0 : index
    %c0_4 = arith.constant 0 : index
    %3 = vector.load %arg3[%c0_3, %c0_4] : memref<1x32xf32, #tpu.memory_space<vmem>>, vector<1x32xf32>
    %4 = vector.broadcast %3 : vector<1x32xf32> to vector<8x32xf32>
    %5 = arith.addf %2, %4 : vector<8x32xf32>
    %cst_5 = arith.constant 0.000000e+00 : f32
    %6 = vector.broadcast %cst_5 : f32 to vector<8x32xf32>
    %7 = arith.cmpf oge, %5, %6 : vector<8x32xf32>
    %cst_6 = arith.constant 0.00999999977 : f32
    %8 = vector.broadcast %cst_6 : f32 to vector<8x32xf32>
    %9 = arith.mulf %8, %5 : vector<8x32xf32>
    %10 = arith.select %7, %5, %9 : vector<8x32xi1>, vector<8x32xf32>
    %c0_7 = arith.constant 0 : index
    %c0_8 = arith.constant 0 : index
    %11 = vector.load %arg4[%c0_7, %c0_8] : memref<32x16xf32, #tpu.memory_space<vmem>>, vector<32x16xf32>
    %cst_9 = arith.constant dense<0.000000e+00> : vector<8x16xf32>
    %12 = tpu.matmul %10, %11, %cst_9 {dimension_numbers = #tpu.dot_dimension_numbers<[1], [0], [0], [1], [0, 0, 1, 1], [], []>} : vector<8x32xf32>, vector<32x16xf32>, vector<8x16xf32> -> vector<8x16xf32>
    %c0_10 = arith.constant 0 : index
    %c0_11 = arith.constant 0 : index
    %13 = vector.load %arg5[%c0_10, %c0_11] : memref<1x16xf32, #tpu.memory_space<vmem>>, vector<1x16xf32>
    %14 = vector.broadcast %13 : vector<1x16xf32> to vector<8x16xf32>
    %15 = arith.addf %12, %14 : vector<8x16xf32>
    %cst_12 = arith.constant 0.000000e+00 : f32
    %16 = vector.broadcast %cst_12 : f32 to vector<8x16xf32>
    %17 = arith.cmpf oge, %15, %16 : vector<8x16xf32>
    %cst_13 = arith.constant 0.00999999977 : f32
    %18 = vector.broadcast %cst_13 : f32 to vector<8x16xf32>
    %19 = arith.mulf %18, %15 : vector<8x16xf32>
    %20 = arith.select %17, %15, %19 : vector<8x16xi1>, vector<8x16xf32>
    %c0_14 = arith.constant 0 : index
    %c0_15 = arith.constant 0 : index
    %21 = vector.load %arg6[%c0_14, %c0_15] : memref<16x4xf32, #tpu.memory_space<vmem>>, vector<16x4xf32>
    %cst_16 = arith.constant dense<0.000000e+00> : vector<8x4xf32>
    %22 = tpu.matmul %20, %21, %cst_16 {dimension_numbers = #tpu.dot_dimension_numbers<[1], [0], [0], [1], [0, 0, 1, 1], [], []>} : vector<8x16xf32>, vector<16x4xf32>, vector<8x4xf32> -> vector<8x4xf32>
    %c0_17 = arith.constant 0 : index
    %c0_18 = arith.constant 0 : index
    %23 = vector.load %arg7[%c0_17, %c0_18] : memref<1x4xf32, #tpu.memory_space<vmem>>, vector<1x4xf32>
    %24 = vector.broadcast %23 : vector<1x4xf32> to vector<8x4xf32>
    %25 = arith.addf %22, %24 : vector<8x4xf32>
    %cst_19 = arith.constant 0.000000e+00 : f32
    %26 = vector.broadcast %cst_19 : f32 to vector<8x4xf32>
    %27 = arith.cmpf oge, %25, %26 : vector<8x4xf32>
    %cst_20 = arith.constant 0.00999999977 : f32
    %28 = vector.broadcast %cst_20 : f32 to vector<8x4xf32>
    %29 = arith.mulf %28, %25 : vector<8x4xf32>
    %30 = arith.select %27, %25, %29 : vector<8x4xi1>, vector<8x4xf32>
    %c0_21 = arith.constant 0 : index
    %c0_22 = arith.constant 0 : index
    %31 = vector.load %arg8[%c0_21, %c0_22] : memref<4x1xf32, #tpu.memory_space<vmem>>, vector<4x1xf32>
    %cst_23 = arith.constant dense<0.000000e+00> : vector<8x1xf32>
    %32 = tpu.matmul %30, %31, %cst_23 {dimension_numbers = #tpu.dot_dimension_numbers<[1], [0], [0], [1], [0, 0, 1, 1], [], []>} : vector<8x4xf32>, vector<4x1xf32>, vector<8x1xf32> -> vector<8x1xf32>
    %c0_24 = arith.constant 0 : index
    %c0_25 = arith.constant 0 : index
    %33 = vector.load %arg9[%c0_24, %c0_25] : memref<1x1xf32, #tpu.memory_space<vmem>>, vector<1x1xf32>
    %34 = vector.broadcast %33 : vector<1x1xf32> to vector<8x1xf32>
    %35 = arith.addf %32, %34 : vector<8x1xf32>
    %cst_26 = arith.constant 0.000000e+00 : f32
    %36 = vector.broadcast %cst_26 : f32 to vector<8x1xf32>
    %37 = arith.cmpf oge, %35, %36 : vector<8x1xf32>
    %cst_27 = arith.constant 0.00999999977 : f32
    %38 = vector.broadcast %cst_27 : f32 to vector<8x1xf32>
    %39 = arith.mulf %38, %35 : vector<8x1xf32>
    %40 = arith.select %37, %35, %39 : vector<8x1xi1>, vector<8x1xf32>
    %c0_28 = arith.constant 0 : index
    %c0_29 = arith.constant 0 : index
    %41 = vector.load %arg10[%c0_28, %c0_29] : memref<8x1xf32, #tpu.memory_space<vmem>>, vector<8x1xf32>
    tpu.vector_store %arg10[%c0_28, %c0_29], %40 {strides = array<i32>} : memref<8x1xf32, #tpu.memory_space<vmem>>, vector<8x1xf32>,
    return
  }
  func.func @transform_0(%arg0: i32) -> (i32, i32) {
    %c0_i32 = arith.constant 0 : i32
    %c0_i32_0 = arith.constant 0 : i32
    return %arg0, %c0_i32 : i32, i32
  }
  func.func @transform_1(%arg0: i32) -> (i32, i32) {
    %c0_i32 = arith.constant 0 : i32
    %c0_i32_0 = arith.constant 0 : i32
    %c0_i32_1 = arith.constant 0 : i32
    return %c0_i32, %c0_i32_0 : i32, i32
  }
  func.func @transform_2(%arg0: i32) -> (i32, i32) {
    %c0_i32 = arith.constant 0 : i32
    %c0_i32_0 = arith.constant 0 : i32
    %c0_i32_1 = arith.constant 0 : i32
    return %c0_i32, %c0_i32_0 : i32, i32
  }
  func.func @transform_3(%arg0: i32) -> (i32, i32) {
    %c0_i32 = arith.constant 0 : i32
    %c0_i32_0 = arith.constant 0 : i32
    %c0_i32_1 = arith.constant 0 : i32
    return %c0_i32, %c0_i32_0 : i32, i32
  }
  func.func @transform_4(%arg0: i32) -> (i32, i32) {
    %c0_i32 = arith.constant 0 : i32
    %c0_i32_0 = arith.constant 0 : i32
    %c0_i32_1 = arith.constant 0 : i32
    return %c0_i32, %c0_i32_0 : i32, i32
  }
  func.func @transform_5(%arg0: i32) -> (i32, i32) {
    %c0_i32 = arith.constant 0 : i32
    %c0_i32_0 = arith.constant 0 : i32
    %c0_i32_1 = arith.constant 0 : i32
    return %c0_i32, %c0_i32_0 : i32, i32
  }
  func.func @transform_6(%arg0: i32) -> (i32, i32) {
    %c0_i32 = arith.constant 0 : i32
    %c0_i32_0 = arith.constant 0 : i32
    %c0_i32_1 = arith.constant 0 : i32
    return %c0_i32, %c0_i32_0 : i32, i32
  }
  func.func @transform_7(%arg0: i32) -> (i32, i32) {
    %c0_i32 = arith.constant 0 : i32
    %c0_i32_0 = arith.constant 0 : i32
    %c0_i32_1 = arith.constant 0 : i32
    return %c0_i32, %c0_i32_0 : i32, i32
  }
  func.func @transform_8(%arg0: i32) -> (i32, i32) {
    %c0_i32 = arith.constant 0 : i32
    %c0_i32_0 = arith.constant 0 : i32
    %c0_i32_1 = arith.constant 0 : i32
    return %c0_i32, %c0_i32_0 : i32, i32
  }
  func.func @transform_9(%arg0: i32) -> (i32, i32) {
    %c0_i32 = arith.constant 0 : i32
    %c0_i32_0 = arith.constant 0 : i32
    return %arg0, %c0_i32 : i32, i32
  }
}

</mosaic_0001>

<bundles_post_ra>
// kernel: fcnn_forward.1
= control target key start
LH: loop header
LB: loop body
LE: loop exit
PB: predicated region body
PF: predicated region fallthrough
CT: control target
= control target key end

     0   :  { %v468_v0 = vmov 0.0   ;;  %vm469_vm0 = vmmov 0   ;;  %vm50_vm1 = vcmask 523264   ;;  %vm138_vm3 = vcmask 261120   ;;  %s606_s1 = inlined_call_operand.vmem [shape: f32[64,32], index: 1, kind: input, shape index: {}]   ;;  %s607_s3 = inlined_call_operand.vmem [shape: f32[32,16], index: 3, kind: input, shape index: {}]   ;;  %s608_s0 = inlined_call_operand.vmem [shape: f32[8,64], index: 0, kind: input, shape index: {}]   ;;  %s609_s2 = inlined_call_operand.vmem [shape: f32[1,32], index: 2, kind: input, shape index: {}]   ;;  %s610_s5 = inlined_call_operand.vmem [shape: f32[16,4], index: 5, kind: input, shape index: {}]   ;;  %s611_s4 = inlined_call_operand.vmem [shape: f32[1,16], index: 4, kind: input, shape index: {}]   ;;  %s612_s7 = inlined_call_operand.vmem [shape: f32[4,1], index: 7, kind: input, shape index: {}]   ;;  %s613_s8 = inlined_call_operand.<no memory space> [shape: f32[1,1], index: 8, kind: input, shape index: {}]   ;;  %s614_s6 = inlined_call_operand.vmem [shape: f32[1,4], index: 6, kind: input, shape index: {}]   ;;  %s615_s9 = inlined_call_operand.vmem [shape: f32[8,1], index: 9, kind: output, shape index: {}]  }
   0x1   :  { %424 = vmatprep.subr.mxu0 %v468_v0  ;;  %v42_v1 = vld [vmem:[%s606_s1 + $0x38] sm:$0xff]  ;;  %v41_v2 = vld [vmem:[%s606_s1 + $0x30] sm:$0xff]  ;;  %440 = vmatprep.mubr.msk.f32.mxu0 %vm469_vm0, %v468_v0  ;;  %v40_v3 = vld [vmem:[%s606_s1 + $0x28] sm:$0xff]  ;;  %vm224_vm5 = vcmask 130048   ;;  %vm313_vm6 = vcmask 1043456   ;;  %v14_v29 = vstv %s613_s8  ;;  %vm309_vm8 = vcmask 31744  }
   0x2   :  { %425 = vmatpush3.msra.mxu0 %v42_v1  ;;  %443 = vmatprep.subr.mxu1 %v468_v0  ;;  %v130_v4 = vld [vmem:[%s607_s3 + $0x18] sm:$0xff]  ;;  %v39_v5 = vld [vmem:[%s606_s1 + $0x20] sm:$0xff]  ;;  %v37_v7 = vld [vmem:[%s606_s1 + $0x10] sm:$0xff]  ;;  %15 = vst [vmem:[#allocation2] sm:$0x1] %v14_v29  ;;  %vm390_vm10 = vcmask 7168  }
   0x3   :  { %426 = vmatprep.subr.mxu0 %v468_v0  ;;  %451 = vmatprep.mubr.msk.f32.mxu1 %vm469_vm0, %v468_v0  ;;  %v38_v6 = vld [vmem:[%s606_s1 + $0x18] sm:$0xff]  ;;  %v36_v8 = vld [vmem:[%s606_s1 + $0x8] sm:$0xff]  ;;  %v35_v9 = vld [vmem:[%s606_s1] sm:$0xff] }
   0x4   :  { %427 = vmatpush3.msra.mxu0 %v41_v2  ;;  %444 = vmatpush3.msra.mxu1 %v130_v4  ;;  %v34_v10 = vld [vmem:[%s608_s0] sm:$0xff]  ;;  %v129_v11 = vld [vmem:[%s607_s3 + $0x10] sm:$0xff]  ;;  %v128_v12 = vld [vmem:[%s607_s3 + $0x8] sm:$0xff] }
   0x5   :  { %428 = vmatprep.subr.mxu0 %v468_v0  ;;  %445 = vmatprep.subr.mxu1 %v468_v0  ;;  %v127_v13 = vld [vmem:[%s607_s3] sm:$0xff]  ;;  %v216_v20 = vld [vmem:[%s610_s5 + $0x8] sm:$0xff] }
   0x6   :  { %429 = vmatpush3.msra.mxu0 %v40_v3  ;;  %446 = vmatpush3.msra.mxu1 %v129_v11  ;;  %v396_v14 = vld [vmem:[%s609_s2] ss:$0 sm:$0xff] }
   0x7   :  { %430 = vmatprep.subr.mxu0 %v468_v0  ;;  %447 = vmatprep.subr.mxu1 %v468_v0  ;;  %v215_v21 = vld [vmem:[%s610_s5] sm:$0xff] }
   0x8   :  { %431 = vmatpush3.msra.mxu0 %v39_v5  ;;  %448 = vmatpush3.msra.mxu1 %v128_v12  ;;  %v398_v22 = vld [vmem:[%s611_s4] ss:$0 sm:$0xff] }
   0x9   :  { %432 = vmatprep.subr.mxu0 %v468_v0  ;;  %449 = vmatprep.subr.mxu1 %v468_v0  ;;  %v301_v28 = vld [vmem:[%s612_s7] sm:$0xf] }
   0xa   :  { %433 = vmatpush3.msra.mxu0 %v38_v6  ;;  %450 = vmatpush3.msra.mxu1 %v127_v13  ;;  %v400_v30 = vld [vmem:[%s614_s6] ss:$0 sm:$0xff] }
   0xb   :  { %434 = vmatprep.subr.mxu0 %v468_v0  ;;  %454 = vmatprep.subr.mxu1 %v468_v0  ;;  %v402_v36 = vld [vmem:[#allocation2] ss:$0 sm:$0xff] }
   0xc   :  { %435 = vmatpush3.msra.mxu0 %v37_v7 }
   0xd   :  { %436 = vmatprep.subr.mxu0 %v468_v0 }
   0xe   :  { %437 = vmatpush3.msra.mxu0 %v36_v8 }
   0xf   :  { %438 = vmatprep.subr.mxu0 %v468_v0 }
  0x10   :  { %439 = vmatpush3.msra.mxu0 %v35_v9 }
  0x11   :  { %441 = vmatmul.mubr.msk.f32.vlgmr.msra.gmra.mxu0 %vm50_vm1, %v34_v10 }
  0xd1   :  { %v120_v15 = vpop.f32.mrf.mxu0 }
  0xd2   :  { %v121_v16 = vadd.f32 %v396_v14, %v120_v15 }
  0xd3   :  { %v442_v17 = vpop.f32.mrf.mxu0 }
  0xd4   :  { %vm124_vm2 = vcmp.ge.f32.partialorder %v121_v16, 0.0  ;;  %v125_v18 = vmul.f32 0.01, %v121_v16 }
  0xd6   :  { %v126_v19 = vsel %vm124_vm2, %v121_v16, %v125_v18 }
  0xd7   :  { %452 = vmatmul.mubr.msk.f32.vlgmr.msra.gmra.mxu1 %vm138_vm3, %v126_v19 }
  0xd8   :  { %458 = vmatprep.mubr.msk.f32.mxu1 %vm469_vm0, %v468_v0  ;;  %455 = vmatpush3.msra.mxu1 %v216_v20 }
  0xd9   :  { %456 = vmatprep.subr.mxu1 %v468_v0 }
  0xda   :  { %457 = vmatpush3.msra.mxu1 %v215_v21 }
  0xdb   :  { %461 = vmatprep.subr.mxu1 %v468_v0 }
 0x197   :  { %v208_v23 = vpop.f32.mrf.mxu1 }
 0x198   :  { %v209_v24 = vadd.f32 %v398_v22, %v208_v23 }
 0x199   :  { %v453_v25 = vpop.f32.mrf.mxu1 }
 0x19a   :  { %vm212_vm4 = vcmp.ge.f32.partialorder %v209_v24, 0.0  ;;  %v213_v26 = vmul.f32 0.01, %v209_v24 }
 0x19c   :  { %v214_v27 = vsel %vm212_vm4, %v209_v24, %v213_v26 }
 0x19d   :  { %459 = vmatmul.mubr.msk.f32.vlgmr.msra.gmra.mxu1 %vm224_vm5, %v214_v27 }
 0x19e   :  { %463 = vmatprep.mubr.msk.f32.mxu1 %vm469_vm0, %v468_v0  ;;  %462 = vmatpush3.msk.msra.mxu1 %vm313_vm6, %v301_v28 }
 0x25d   :  { %v294_v31 = vpop.f32.mrf.mxu1 }
 0x25e   :  { %v295_v32 = vadd.f32 %v400_v30, %v294_v31 }
 0x25f   :  { %v460_v33 = vpop.f32.mrf.mxu1 }
 0x260   :  { %vm298_vm7 = vcmp.ge.f32.partialorder %v295_v32, 0.0  ;;  %v299_v34 = vmul.f32 0.01, %v295_v32 }
 0x262   :  { %v300_v35 = vsel %vm298_vm7, %v295_v32, %v299_v34 }
 0x263   :  { %464 = vmatmul.mubr.msk.f32.vlgmr.msra.gmra.mxu1 %vm309_vm8, %v300_v35 }
 0x323   :  { %v383_v37 = vpop.f32.mrf.mxu1 }
 0x324   :  { %v384_v38 = vadd.f32 %v402_v36, %v383_v37 }
 0x325   :  { %v465_v39 = vpop.f32.mrf.mxu1 }
 0x326   :  { %vm387_vm9 = vcmp.ge.f32.partialorder %v384_v38, 0.0  ;;  %v388_v40 = vmul.f32 0.01, %v384_v38 }
 0x328   :  { %v389_v41 = vsel %vm387_vm9, %v384_v38, %v388_v40 }
 0x329   :  { %391 = vst.msk [vmem:[%s615_s9] sm:$0xff] %vm390_vm10, %v389_v41 }

</bundles_post_ra>
